<compile_context>
chip_gen: v6e
topology: v6e:2x2x1
jax: 0.10.0
libtpu: 0.0.40
codegen_flags: <defaults>
</compile_context>

<pallas_src>
import jax
import jax.numpy as jnp
from jax.experimental import pallas as pl
from jax.experimental.pallas import tpu as pltpu


def _round_up(x, m):
    return ((x + m - 1) // m) * m


# ----------------------------------------------------------------------------
# Kernel
# ----------------------------------------------------------------------------
def actor_kernel(x_ref, w1_ref, b1_ref, w2_ref, b2_ref, out_ref):
    # Layer 1: Linear(in_size, 128) + ReLU. bf16 MXU operands, f32 accumulation.
    x_bf = x_ref[...].astype(jnp.bfloat16)
    h = jnp.dot(x_bf, w1_ref[...], preferred_element_type=jnp.float32)
    h = jnp.maximum(h + b1_ref[...], 0.0)          # bias + ReLU in f32 (VPU)

    # Dropout(p=0.7): identity at inference time.

    # Layer 2: Linear(128, out_padded). Padded columns carry W2=0, b2=-1e30 so
    # exp(logit - max) underflows to exactly 0 for padded lanes.
    logits = jnp.dot(h.astype(jnp.bfloat16), w2_ref[...],
                     preferred_element_type=jnp.float32)
    logits = logits + b2_ref[...]

    # Numerically-stable softmax over the feature axis (all f32).
    m = jnp.max(logits, axis=-1, keepdims=True)
    e = jnp.exp(logits - m)
    denom = jnp.sum(e, axis=-1, keepdims=True)
    # Exact reciprocal: one per row, noise in a latency-bound kernel, and it
    # keeps probabilities summing to 1 within 1e-5.
    out_ref[...] = e * pl.reciprocal(denom, approx=False)


# ----------------------------------------------------------------------------
# One-time parameter preparation (do NOT call per forward step)
# ----------------------------------------------------------------------------
def prepare_actor_params(w1, b1, w2, b2):
    """Pads W2/b2 to a lane-dense multiple of 128 and casts matmul weights to
    bf16. Padded W2 columns are 0 and padded b2 entries are -1e30 so padded
    lanes get exactly zero softmax probability. Call once, reuse every step.

    Note: if a consumer ever reads the padded output slab directly, log() of
    the padded lanes would be -inf; the forward wrapper slices them away.
    """
    in_size, hidden = w1.shape
    out_size = w2.shape[1]
    out_p = _round_up(out_size, 128)

    w2_pad = jnp.zeros((hidden, out_p), jnp.float32).at[:, :out_size].set(w2)
    b2_pad = jnp.full((1, out_p), -1e30, jnp.float32).at[:, :out_size].set(
        jnp.asarray(b2, jnp.float32).reshape(1, out_size))

    return (jnp.asarray(w1, jnp.float32).astype(jnp.bfloat16),
            jnp.asarray(b1, jnp.float32).reshape(1, hidden),
            w2_pad.astype(jnp.bfloat16),
            b2_pad,
            out_size)


# ----------------------------------------------------------------------------
# Forward wrapper
# ----------------------------------------------------------------------------
def actor_forward(x, params, *, tb=256):
    """x: (in_size,) or (B, in_size); params from prepare_actor_params.
    Returns probabilities of shape (1, out_size) / (B, out_size)."""
    w1, b1, w2_pad, b2_pad, out_size = params

    x2d = jnp.atleast_2d(jnp.asarray(x, jnp.float32))   # unsqueeze(0) for 1-D input
    B, in_size = x2d.shape
    hidden = w1.shape[1]
    out_p = w2_pad.shape[1]

    # ---- batch tiling --------------------------------------------------------
    bp8 = _round_up(B, 8)
    if bp8 >= 16:
        # Guarantee >= 2 grid steps so ("parallel",) can use both v7x TCs;
        # still capped at tb (default 256) to amortize per-step overhead.
        tb = min(tb, max(8, _round_up((bp8 + 1) // 2, 8)))
    else:
        tb = bp8
    bp = _round_up(B, tb)

    # Only materialize a padded copy of x when actually needed.
    x_pad = x2d if bp == B else jnp.pad(x2d, ((0, bp - B), (0, 0)))

    grid = (bp // tb,)

    cost = pl.CostEstimate(
        flops=2 * bp * (in_size * hidden + hidden * out_p),
        transcendentals=bp * out_p,
        bytes_accessed=(4 * bp * in_size                 # x (f32)
                        + 2 * (in_size * hidden + hidden * out_p)  # bf16 weights
                        + 4 * (hidden + out_p)           # biases (f32)
                        + 4 * bp * out_p),               # output (f32)
    )

    out_pad = pl.pallas_call(
        actor_kernel,
        out_shape=jax.ShapeDtypeStruct((bp, out_p), jnp.float32),
        grid=grid,
        in_specs=[
            pl.BlockSpec((tb, in_size), lambda i: (i, 0)),       # x tile (batched)
            # Constant block index -> Pallas does not re-DMA these per step.
            pl.BlockSpec((in_size, hidden), lambda i: (0, 0)),   # W1 (bf16)
            pl.BlockSpec((1, hidden), lambda i: (0, 0)),         # b1 (f32)
            pl.BlockSpec((hidden, out_p), lambda i: (0, 0)),     # W2 (bf16, padded)
            pl.BlockSpec((1, out_p), lambda i: (0, 0)),          # b2 (f32, padded)
        ],
        out_specs=pl.BlockSpec((tb, out_p), lambda i: (i, 0)),   # lane-dense output
        compiler_params=pltpu.CompilerParams(
            dimension_semantics=("parallel",),
        ),
        cost_estimate=cost,
    )(x_pad, w1, b1, w2_pad, b2_pad)

    # Slice back to the caller-visible shape only if padding was applied.
    if bp != B or out_p != out_size:
        return out_pad[:B, :out_size]
    return out_pad


# ----------------------------------------------------------------------------
# Parameter init (nn.Linear-style U(-1/sqrt(fan_in), 1/sqrt(fan_in)))
# ----------------------------------------------------------------------------
def init_actor_params(key, in_size, out_size, hidden=128):
    """Weights stored as (in_features, out_features) (transposed vs. PyTorch)."""
    k1, k2, k3, k4 = jax.random.split(key, 4)
    bound1 = 1.0 / jnp.sqrt(in_size)
    bound2 = 1.0 / jnp.sqrt(hidden)
    w1 = jax.random.uniform(k1, (in_size, hidden), jnp.float32, -bound1, bound1)
    b1 = jax.random.uniform(k2, (1, hidden), jnp.float32, -bound1, bound1)
    w2 = jax.random.uniform(k3, (hidden, out_size), jnp.float32, -bound2, bound2)
    b2 = jax.random.uniform(k4, (1, out_size), jnp.float32, -bound2, bound2)
    return w1, b1, w2, b2


# ----------------------------------------------------------------------------
# References
# ----------------------------------------------------------------------------
def _reference_f32(x2d, w1, b1, w2, b2):
    # Pure f32 reference (PyTorch semantics).
    h = jnp.maximum(x2d @ w1 + b1, 0.0)
    return jax.nn.softmax(h @ w2 + b2, axis=1)


def _reference_bf16(x2d, w1, b1, w2, b2):
    # Reference that applies the same bf16 matmul-operand rounding as the kernel.
    h = jnp.dot(x2d.astype(jnp.bfloat16), w1.astype(jnp.bfloat16),
                preferred_element_type=jnp.float32) + b1
    h = jnp.maximum(h, 0.0)
    logits = jnp.dot(h.astype(jnp.bfloat16), w2.astype(jnp.bfloat16),
                     preferred_element_type=jnp.float32) + b2
    return jax.nn.softmax(logits, axis=1)


if __name__ == "__main__":
    in_size, out_size = 16, 4

    key = jax.random.PRNGKey(0)
    pkey, xkey, bkey = jax.random.split(key, 3)
    w1, b1, w2, b2 = init_actor_params(pkey, in_size, out_size)
    params = prepare_actor_params(w1, b1, w2, b2)   # one-time layout prep

    # Single-observation path (matches the PyTorch forward's unsqueeze(0)).
    x_single = jax.random.normal(xkey, (in_size,), jnp.float32)
    probs_single = jax.block_until_ready(actor_forward(x_single, params))

    # Batched rollout-style path: B=20 exercises >1 grid step and row padding.
    batch = 20
    x_batch = jax.random.normal(bkey, (batch, in_size), jnp.float32)
    probs_batch = jax.block_until_ready(actor_forward(x_batch, params))

    # Sanity checks.
    ref_s_bf16 = _reference_bf16(x_single.reshape(1, -1), w1, b1, w2, b2)
    ref_b_bf16 = _reference_bf16(x_batch, w1, b1, w2, b2)
    ref_s_f32 = _reference_f32(x_single.reshape(1, -1), w1, b1, w2, b2)
    ref_b_f32 = _reference_f32(x_batch, w1, b1, w2, b2)

    assert probs_single.shape == (1, out_size)
    assert probs_batch.shape == (batch, out_size)
    # Exact reciprocal -> probabilities sum to 1 within tight tolerance.
    assert jnp.allclose(jnp.sum(probs_single, axis=1), 1.0, atol=1e-5)
    assert jnp.allclose(jnp.sum(probs_batch, axis=1), 1.0, atol=1e-5)
    # Matches a bf16-operand-consistent reference tightly.
    assert jnp.allclose(probs_single, ref_s_bf16, atol=1e-5)
    assert jnp.allclose(probs_batch, ref_b_bf16, atol=1e-5)
    # Matches the pure-f32 (PyTorch-semantics) reference within bf16 rounding.
    assert jnp.allclose(probs_single, ref_s_f32, atol=2e-2)
    assert jnp.allclose(probs_batch, ref_b_f32, atol=2e-2)

    print("KERNEL_OK")
</pallas_src>

<mosaic_0001>
module attributes {stable_mosaic.version = 11 : i64} {
  func.func @actor_kernel(%arg0: i32, %arg1: memref<8x16xf32, #tpu.memory_space<vmem>>, %arg2: memref<16x128xbf16, #tpu.memory_space<vmem>>, %arg3: memref<1x128xf32, #tpu.memory_space<vmem>>, %arg4: memref<128x128xbf16, #tpu.memory_space<vmem>>, %arg5: memref<1x128xf32, #tpu.memory_space<vmem>>, %arg6: memref<8x128xf32, #tpu.memory_space<vmem>>) attributes {dimension_semantics = [#tpu.dimension_semantics<parallel>], iteration_bounds = array<i64: 1>, scalar_prefetch = 0 : i64, scratch_operands = 0 : i64, tpu.core_type = #tpu.core_type<tc>, window_params = [{transform_indices = @transform_0, window_bounds = array<i64: 8, 16>}, {pipeline_mode = #tpu.pipeline_mode<synchronous>, transform_indices = @transform_1, window_bounds = array<i64: 16, 128>}, {pipeline_mode = #tpu.pipeline_mode<synchronous>, transform_indices = @transform_2, window_bounds = array<i64: 1, 128>}, {pipeline_mode = #tpu.pipeline_mode<synchronous>, transform_indices = @transform_3, window_bounds = array<i64: 128, 128>}, {pipeline_mode = #tpu.pipeline_mode<synchronous>, transform_indices = @transform_4, window_bounds = array<i64: 1, 128>}, {transform_indices = @transform_5, window_bounds = array<i64: 8, 128>}]} {
    %c0 = arith.constant 0 : index
    %c0_0 = arith.constant 0 : index
    %0 = vector.load %arg1[%c0, %c0_0] : memref<8x16xf32, #tpu.memory_space<vmem>>, vector<8x16xf32>
    %1 = arith.truncf %0 : vector<8x16xf32> to vector<8x16xbf16>
    %c0_1 = arith.constant 0 : index
    %c0_2 = arith.constant 0 : index
    %2 = vector.load %arg2[%c0_1, %c0_2] : memref<16x128xbf16, #tpu.memory_space<vmem>>, vector<16x128xbf16>
    %cst = arith.constant dense<0.000000e+00> : vector<8x128xf32>
    %3 = tpu.matmul %1, %2, %cst {dimension_numbers = #tpu.dot_dimension_numbers<[1], [0], [0], [1], [0, 0, 1, 1], [], []>} : vector<8x16xbf16>, vector<16x128xbf16>, vector<8x128xf32> -> vector<8x128xf32>
    %c0_3 = arith.constant 0 : index
    %c0_4 = arith.constant 0 : index
    %4 = vector.load %arg3[%c0_3, %c0_4] : memref<1x128xf32, #tpu.memory_space<vmem>>, vector<1x128xf32>
    %5 = vector.broadcast %4 : vector<1x128xf32> to vector<8x128xf32>
    %6 = arith.addf %3, %5 : vector<8x128xf32>
    %cst_5 = arith.constant 0.000000e+00 : f32
    %7 = vector.broadcast %cst_5 : f32 to vector<8x128xf32>
    %8 = arith.maximumf %6, %7 : vector<8x128xf32>
    %9 = arith.truncf %8 : vector<8x128xf32> to vector<8x128xbf16>
    %c0_6 = arith.constant 0 : index
    %c0_7 = arith.constant 0 : index
    %10 = vector.load %arg4[%c0_6, %c0_7] : memref<128x128xbf16, #tpu.memory_space<vmem>>, vector<128x128xbf16>
    %cst_8 = arith.constant dense<0.000000e+00> : vector<8x128xf32>
    %11 = tpu.matmul %9, %10, %cst_8 {dimension_numbers = #tpu.dot_dimension_numbers<[1], [0], [0], [1], [0, 0, 1, 1], [], []>} : vector<8x128xbf16>, vector<128x128xbf16>, vector<8x128xf32> -> vector<8x128xf32>
    %c0_9 = arith.constant 0 : index
    %c0_10 = arith.constant 0 : index
    %12 = vector.load %arg5[%c0_9, %c0_10] : memref<1x128xf32, #tpu.memory_space<vmem>>, vector<1x128xf32>
    %13 = vector.broadcast %12 : vector<1x128xf32> to vector<8x128xf32>
    %14 = arith.addf %11, %13 : vector<8x128xf32>
    %cst_11 = arith.constant dense<0xFF800000> : vector<8xf32>
    %15 = vector.multi_reduction <maximumf>, %14, %cst_11 [1] : vector<8x128xf32> to vector<8xf32>
    %16 = vector.shape_cast %15 : vector<8xf32> to vector<8x1xf32>
    %17 = vector.broadcast %16 : vector<8x1xf32> to vector<8x128xf32>
    %18 = arith.subf %14, %17 : vector<8x128xf32>
    %19 = math.exp %18 : vector<8x128xf32>
    %cst_12 = arith.constant dense<0.000000e+00> : vector<8xf32>
    %20 = vector.multi_reduction <add>, %19, %cst_12 [1] : vector<8x128xf32> to vector<8xf32>
    %21 = vector.shape_cast %20 : vector<8xf32> to vector<8x1xf32>
    %22 = tpu.reciprocal %21 : vector<8x1xf32> -> vector<8x1xf32>
    %23 = vector.broadcast %22 : vector<8x1xf32> to vector<8x128xf32>
    %24 = arith.mulf %19, %23 : vector<8x128xf32>
    %c0_13 = arith.constant 0 : index
    %c0_14 = arith.constant 0 : index
    %25 = vector.load %arg6[%c0_13, %c0_14] : memref<8x128xf32, #tpu.memory_space<vmem>>, vector<8x128xf32>
    tpu.vector_store %arg6[%c0_13, %c0_14], %24 {strides = array<i32>} : memref<8x128xf32, #tpu.memory_space<vmem>>, vector<8x128xf32>,
    return
  }
  func.func @transform_0(%arg0: i32) -> (i32, i32) {
    %c0_i32 = arith.constant 0 : i32
    %c0_i32_0 = arith.constant 0 : i32
    return %arg0, %c0_i32 : i32, i32
  }
  func.func @transform_1(%arg0: i32) -> (i32, i32) {
    %c0_i32 = arith.constant 0 : i32
    %c0_i32_0 = arith.constant 0 : i32
    %c0_i32_1 = arith.constant 0 : i32
    return %c0_i32, %c0_i32_0 : i32, i32
  }
  func.func @transform_2(%arg0: i32) -> (i32, i32) {
    %c0_i32 = arith.constant 0 : i32
    %c0_i32_0 = arith.constant 0 : i32
    %c0_i32_1 = arith.constant 0 : i32
    return %c0_i32, %c0_i32_0 : i32, i32
  }
  func.func @transform_3(%arg0: i32) -> (i32, i32) {
    %c0_i32 = arith.constant 0 : i32
    %c0_i32_0 = arith.constant 0 : i32
    %c0_i32_1 = arith.constant 0 : i32
    return %c0_i32, %c0_i32_0 : i32, i32
  }
  func.func @transform_4(%arg0: i32) -> (i32, i32) {
    %c0_i32 = arith.constant 0 : i32
    %c0_i32_0 = arith.constant 0 : i32
    %c0_i32_1 = arith.constant 0 : i32
    return %c0_i32, %c0_i32_0 : i32, i32
  }
  func.func @transform_5(%arg0: i32) -> (i32, i32) {
    %c0_i32 = arith.constant 0 : i32
    %c0_i32_0 = arith.constant 0 : i32
    return %arg0, %c0_i32 : i32, i32
  }
}

</mosaic_0001>

<bundles_post_ra>
// kernel: tpu_custom_call.1
= control target key start
LH: loop header
LB: loop body
LE: loop exit
PB: predicated region body
PF: predicated region fallthrough
CT: control target
= control target key end

     0   :  { %10 = vsyncpa [#allocation3], 0  ;;  %s473_s0 = inlined_call_operand.hbm [shape: f32[8,16], index: 0, kind: input, shape index: {}]   ;;  %s474_s1 = inlined_call_operand.hbm [shape: bf16[16,128], index: 1, kind: input, shape index: {}]   ;;  %s475_s2 = inlined_call_operand.vmem [shape: f32[1,128], index: 2, kind: input, shape index: {}]   ;;  %s476_s3 = inlined_call_operand.hbm [shape: bf16[128,128], index: 3, kind: input, shape index: {}]   ;;  %s477_s4 = inlined_call_operand.vmem [shape: f32[1,128], index: 4, kind: input, shape index: {}]   ;;  %s478_s5 = inlined_call_operand.hbm [shape: f32[8,128], index: 5, kind: output, shape index: {}]  }
   0x1   :  { %11 = vsyncpa [#allocation6], 0 }
   0x2   :  { %12 = vsyncpa [#allocation4], 0  ;;  %s417_s18 = smov [#allocation5]  }
   0x3   :  { %s28_s19 = sshll.u32 %s417_s18, 4  ;;  %s29_s19 = int_to_ptr.vmem [resolvable:$true] %s28_s19 }
   0x4   :  { %s339_s20 = scalar_lea.vmem %s29_s19, 128  ;;  %p344_p1 = scmp.lt.s32.totalorder %s29_s19, %s29_s19 }
   0x5   :  { %p340_p0 = scmp.ne.s32.totalorder %s29_s19, %s339_s20  ;;  %p345_p2 = scmp.lt.s32.totalorder %s339_s20, %s339_s20 }
   0x7   :  { %p346_p3 = por %p345_p2, %p344_p1 }
   0x9   :  { %p347_p4 = pnand %p346_p3, %p340_p0 }
   0xb   :  { %350 = shalt.err (!%p347_p4)
}
   0xc   :  { %s418_s21 = smov 64   ;;  %s419_s22 = smov 4  }
   0xd   :  { %34 = dma.hbm_to_vmem [thread:$0]  %s474_s1, 128, %s29_s19, [#allocation6], %s418_s21, %s418_s21, %s419_s22  }
   0xe   :  { %s420_s25 = smov [#allocation2]   ;;  %s421_s27 = smov [#allocation7]  }
   0xf   :  { %s19_s26 = sshll.u32 %s420_s25, 4  ;;  %s42_s28 = sshll.u32 %s421_s27, 4  ;;  %s20_s26 = int_to_ptr.vmem [resolvable:$true] %s19_s26  ;;  %s43_s28 = int_to_ptr.vmem [resolvable:$true] %s42_s28 }
  0x10   :  { %s359_s29 = scalar_lea.vmem %s20_s26, 128  ;;  %p364_p6 = scmp.lt.s32.totalorder %s20_s26, %s20_s26 }
  0x11   :  { %p360_p5 = scmp.ne.s32.totalorder %s20_s26, %s359_s29  ;;  %p365_p7 = scmp.lt.s32.totalorder %s359_s29, %s359_s29 }
  0x13   :  { %p366_p8 = por %p365_p7, %p364_p6 }
  0x15   :  { %p367_p9 = pnand %p366_p8, %p360_p5 }
  0x17   :  { %370 = shalt.err (!%p367_p9)
}
  0x18   :  { %22 = dma.hbm_to_vmem [thread:$0]  %s473_s0, 128, %s20_s26, [#allocation3]  }
  0x19   :  { %s379_s7 = scalar_lea.vmem %s43_s28, 1024  ;;  %p384_p11 = scmp.lt.s32.totalorder %s43_s28, %s43_s28 }
  0x1a   :  { %p380_p10 = scmp.ne.s32.totalorder %s43_s28, %s379_s7  ;;  %p385_p12 = scmp.lt.s32.totalorder %s379_s7, %s379_s7 }
  0x1c   :  { %p386_p13 = por %p385_p12, %p384_p11 }
  0x1e   :  { %p387_p0 = pnand %p386_p13, %p380_p10 }
  0x20   :  { %390 = shalt.err (!%p387_p0)
}
  0x21   :  { %48 = dma.hbm_to_vmem [thread:$0]  %s476_s3, 1024, %s43_s28, [#allocation6], %s418_s21, %s418_s21, %s419_s22  }
  0x22   :  { %411 = dma.done.wait [#allocation3], 128  }
  0x23   :  { %412 = vsyncadd [#allocation3], 4294967168 }
  0x24   :  { %413 = dma.done.wait [#allocation6], 1152  }
  0x25   :  { %414 = vsyncadd [#allocation6], 4294966144  ;;  %v422_v0 = vmov 0.0   ;;  %vm423_vm0 = vmmov 0   ;;  %v318_v1 = vld [vmem:[#allocation5] sm:$0xff]   ;;  %v61_v2 = vld [vmem:[#allocation2] sm:$0xff] }
  0x26   :  { %284 = vmatprep.subr.bf16.mxu0 %v422_v0  ;;  %286 = vmatprep.mubr.msk.bf16.mxu0 %vm423_vm0, %v422_v0  ;;  %v62_v3 = vpack.c.bf16 %v61_v2, %v61_v2  ;;  %vm78_vm1 = vcmask 130048   ;;  %v319_v4 = vld [vmem:[#allocation7 + $0x38] sm:$0xff]   ;;  %v320_v5 = vld [vmem:[#allocation7 + $0x30] sm:$0xff]   ;;  %v321_v6 = vld [vmem:[#allocation7 + $0x28] sm:$0xff]  }
  0x27   :  { %290 = vmatprep.subr.bf16.mxu1 %v422_v0  ;;  %306 = vmatprep.mubr.msk.bf16.mxu1 %vm423_vm0, %v422_v0  ;;  %v322_v7 = vld [vmem:[#allocation7 + $0x20] sm:$0xff]   ;;  %v323_v8 = vld [vmem:[#allocation7 + $0x18] sm:$0xff]   ;;  %v324_v9 = vld [vmem:[#allocation7 + $0x10] sm:$0xff]  }
  0x28   :  { %285 = vmatpush3.bf16.msra.mxu0 %v318_v1  ;;  %291 = vmatpush3.bf16.msra.mxu1 %v319_v4  ;;  %v325_v10 = vld [vmem:[#allocation7 + $0x8] sm:$0xff]   ;;  %v326_v11 = vld [vmem:[#allocation7] sm:$0xff]   ;;  %v261_v12 = vld [vmem:[%s475_s2] ss:$0 sm:$0xff]  ;;  %s424_s2 = smov [#allocation8]  }
  0x29   :  { %292 = vmatprep.subr.bf16.mxu1 %v422_v0  ;;  %v264_v20 = vld [vmem:[%s477_s4] ss:$0 sm:$0xff]  ;;  %s251_s11 = sshll.u32 %s424_s2, 4  ;;  %s252_s11 = int_to_ptr.vmem [resolvable:$true] %s251_s11 }
  0x2a   :  { %s391_s4 = scalar_lea.vmem %s252_s11, 128  ;;  %p396_p2 = scmp.lt.s32.totalorder %s252_s11, %s252_s11 }
  0x2b   :  { %287 = vmatmul.mubr.msk.bf16.vlgmr.msra.gmra.mxu0 %vm78_vm1, %v62_v3  ;;  %p392_p1 = scmp.ne.s32.totalorder %s252_s11, %s391_s4  ;;  %p397_p3 = scmp.lt.s32.totalorder %s391_s4, %s391_s4 }
  0x2c   :  { %293 = vmatpush3.bf16.msra.mxu1 %v320_v5 }
  0x2d   :  { %294 = vmatprep.subr.bf16.mxu1 %v422_v0  ;;  %p398_p4 = por %p397_p3, %p396_p2 }
  0x2f   :  { %p399_p5 = pnand %p398_p4, %p392_p1 }
  0x30   :  { %295 = vmatpush3.bf16.msra.mxu1 %v321_v6 }
  0x31   :  { %296 = vmatprep.subr.bf16.mxu1 %v422_v0 }
  0x34   :  { %297 = vmatpush3.bf16.msra.mxu1 %v322_v7 }
  0x35   :  { %298 = vmatprep.subr.bf16.mxu1 %v422_v0 }
  0x38   :  { %299 = vmatpush3.bf16.msra.mxu1 %v323_v8 }
  0x39   :  { %300 = vmatprep.subr.bf16.mxu1 %v422_v0 }
  0x3c   :  { %301 = vmatpush3.bf16.msra.mxu1 %v324_v9 }
  0x3d   :  { %302 = vmatprep.subr.bf16.mxu1 %v422_v0 }
  0x40   :  { %303 = vmatpush3.bf16.msra.mxu1 %v325_v10 }
  0x41   :  { %304 = vmatprep.subr.bf16.mxu1 %v422_v0 }
  0x44   :  { %305 = vmatpush3.bf16.msra.mxu1 %v326_v11 }
  0xeb   :  { %v116_v13 = vpop.f32.mrf.mxu0 }
  0xec   :  { %v117_v14 = vadd.f32 %v261_v12, %v116_v13 }
  0xed   :  { %v288_v15 = vpop.f32.mrf.mxu0 }
  0xee   :  { %v122_v16 = vmax.f32 %v117_v14, 0.0 }
  0xef   :  { %v119_v17 = vpop.f32.mrf.mxu0 }
  0xf0   :  { %v123_v18 = vpack.c.bf16 %v122_v16, %v122_v16 }
  0xf1   :  { %v289_v19 = vpop.f32.mrf.mxu0 }
  0xf2   :  { %307 = vmatmul.mubr.bf16.vlgmr.msra.gmra.mxu1 %v123_v18 }
 0x1b2   :  { %v229_v21 = vpop.f32.mrf.mxu1 }
 0x1b3   :  { %v230_v22 = vadd.f32 %v264_v20, %v229_v21 }
 0x1b4   :  { %v308_v23 = vpop.f32.mrf.mxu1 }
 0x1b5   :  { %235 = vmax.xlane.f32.xlu0 %v230_v22 }
 0x1b6   :  { %v232_v24 = vpop.f32.mrf.mxu1 }
 0x1b8   :  { %v309_v25 = vpop.f32.mrf.mxu1 }
 0x23e   :  { %v236_v26 = vpop.xlane.xlu0 %235 }
 0x23f   :  { %v237_v27 = vsub.f32 %v230_v22, %v236_v26 }
 0x241   :  { %v238_v28 = vmul.f32 1.442695, %v237_v27 }
 0x243   :  { %327 = vpow2.f32 %v238_v28 }
 0x250   :  { %v328_v29 = vpop.eup %327 }
 0x251   :  { %240 = vadd.xlane.f32.xlu0 %v328_v29 }
 0x2da   :  { %v241_v30 = vpop.xlane.xlu0 %240 }
 0x2db   :  { %329 = vrcp.f32 %v241_v30 }
 0x2e8   :  { %v330_v31 = vpop.eup %329 }
 0x2e9   :  { %v243_v32 = vmul.f32 %v330_v31, %v328_v29 }
 0x2eb   :  { %244 = vst [vmem:[#allocation8] sm:$0xff] %v243_v32 }
 0x2ec   :  { %402 = shalt.err (!%p399_p5)
}
 0x2ed   :  { %254 = dma.vmem_to_hbm [thread:$0]  %s252_s11, 128, %s478_s5, [#allocation4]  }
 0x2ee   :  { %415 = dma.done.wait [#allocation4], 128  }
 0x2ef   :  { %416 = vsyncadd [#allocation4], 4294967168 }
 0x2f0   :  { %258 = vsyncpa [#allocation3], 1 }
 0x2f1   :  { %259 = vsyncpa [#allocation6], 1 }
 0x2f2   :  { %260 = vsyncpa [#allocation4], 1 }

</bundles_post_ra>
